<compile_context>
chip_gen: v6e
topology: v6e:2x2x1
jax: 0.10.0
libtpu: 0.0.40
codegen_flags: <defaults>
</compile_context>

<pallas_src>
import functools
from typing import List, NamedTuple, Tuple

import jax
import jax.numpy as jnp
from jax.experimental import pallas as pl
from jax.experimental.pallas import tpu as pltpu

_LANE = 128      # last-dim (lane) alignment
_SUBLANE = 8     # second-to-last-dim alignment for f32


def _round_up(x: int, m: int) -> int:
    return ((x + m - 1) // m) * m


# --------------------------------------------------------------------------
# One-time parameter preparation (padding + dtype cast hoisted out of forward)
# --------------------------------------------------------------------------
class PreparedMLP(NamedTuple):
    weights: Tuple[jax.Array, ...]   # (din_pad, dout_pad) in compute_dtype
    biases: Tuple[jax.Array, ...]    # (1, dout_pad) in float32
    dims: Tuple[int, ...]            # logical feature size at each boundary
    pdims: Tuple[int, ...]           # 128-padded feature sizes


def prepare_mlp_params(params, d_in: int, compute_dtype=jnp.float32) -> PreparedMLP:
    """Pad feature dims to 128 lanes and cast weights to the MXU compute dtype.

    Done ONCE per set of parameters; `mlp_forward` never re-pads weights.
    Zero padding is numerically inert (zero cols x zero rows, zero bias,
    tanh(0) = 0), and padded rows/cols are sliced off at the end.
    """
    dims = [d_in] + [w.shape[1] for (w, _) in params]
    pdims = [_round_up(d, _LANE) for d in dims]
    ws, bs = [], []
    for l, (w, b) in enumerate(params):
        di, do = w.shape
        wp = jnp.zeros((pdims[l], pdims[l + 1]), compute_dtype)
        wp = wp.at[:di, :do].set(w.astype(compute_dtype))
        bp = jnp.zeros((1, pdims[l + 1]), jnp.float32)
        bp = bp.at[0, :do].set(b.astype(jnp.float32))
        ws.append(wp)
        bs.append(bp)
    return PreparedMLP(tuple(ws), tuple(bs), tuple(dims), tuple(pdims))


# --------------------------------------------------------------------------
# Kernel: one batch tile through all layers, activations stay in vregs/VMEM.
# --------------------------------------------------------------------------
def _mlp_kernel(x_ref, *refs, n_layers: int):
    """refs = (w0, b0, w1, b1, ..., w_{L-1}, b_{L-1}, o_ref).

    Weights are already in the compute dtype (no in-kernel weight casts);
    activations are cast per layer, matmul accumulates in f32 on the MXU,
    bias-add + tanh stay in f32.
    """
    o_ref = refs[-1]
    h = x_ref[...]                            # (tb, d0_pad), f32
    for l in range(n_layers):                 # static unroll over layers
        w = refs[2 * l][...]                  # (din_pad, dout_pad), compute dtype
        b = refs[2 * l + 1][...]              # (1, dout_pad), f32
        y = jnp.dot(h.astype(w.dtype), w,
                    preferred_element_type=jnp.float32) + b
        h = jnp.tanh(y) if l < n_layers - 1 else y
    o_ref[...] = h.astype(o_ref.dtype)
    # TODO(synk): if a bundle dump shows spill vld/vst for very large batch
    # tiles, add an inner lax.fori_loop(unroll=True) over 128-row sub-tiles
    # here instead of shrinking the grid tile.


# --------------------------------------------------------------------------
# Wrapper
# --------------------------------------------------------------------------
def _pick_batch_tile(B: int, block_batch) -> int:
    if block_batch is not None:
        tb = int(block_batch)
    elif B >= 512:
        # Large batch: aim for >=2 tiles (one per v7x TensorCore) but cap the
        # tile so the step count stays small on single-TC chips too.
        tb = min(512, _round_up(B, 2 * _SUBLANE) // 2)
    else:
        # Small batch: one tile covering everything (min per-step overhead).
        tb = _round_up(max(B, _SUBLANE), _SUBLANE)
    tb = max(_SUBLANE, (tb // _SUBLANE) * _SUBLANE)
    return min(tb, 1024)


def mlp_forward(x, prep: PreparedMLP, *, block_batch: int = None):
    """Apply the MLP: tanh after every layer except the last.

    x: (B, d_in) float32; prep: output of prepare_mlp_params.
    """
    B, d0 = x.shape
    assert d0 == prep.dims[0], (d0, prep.dims[0])
    n_layers = len(prep.weights)
    pdims = prep.pdims

    tb = _pick_batch_tile(B, block_batch)
    B_pad = _round_up(B, tb)

    # Only the activations are padded per call (they change every call).
    x_pad = jnp.zeros((B_pad, pdims[0]), x.dtype).at[:B, :d0].set(x)

    # BlockSpecs: x/out tiled over batch; weights/biases are whole-array,
    # grid-invariant blocks -> single-buffered (no useless 2x VMEM).
    resident = pl.Buffered(1)
    in_specs = [pl.BlockSpec((tb, pdims[0]), lambda i: (i, 0))]
    for l in range(n_layers):
        in_specs.append(pl.BlockSpec((pdims[l], pdims[l + 1]), lambda i: (0, 0),
                                     pipeline_mode=resident))
        in_specs.append(pl.BlockSpec((1, pdims[l + 1]), lambda i: (0, 0),
                                     pipeline_mode=resident))
    out_spec = pl.BlockSpec((tb, pdims[-1]), lambda i: (i, 0))

    # VMEM budget: resident weights (1x) + biases + double-buffered x/out
    # tiles + working-activation headroom. Raise the scoped limit when needed
    # (cap at 64 MiB so it is also valid per-TC on v7x).
    w_itemsize = jnp.dtype(prep.weights[0].dtype).itemsize
    w_bytes = sum(pdims[l] * pdims[l + 1] for l in range(n_layers)) * w_itemsize
    b_bytes = sum(_SUBLANE * pdims[l + 1] * 4 for l in range(n_layers))
    io_bytes = 2 * tb * (pdims[0] + pdims[-1]) * jnp.dtype(x.dtype).itemsize
    act_bytes = 2 * tb * max(pdims) * 4
    needed = w_bytes + b_bytes + io_bytes + act_bytes
    vmem_limit = int(min(max(needed * 3 // 2, 32 << 20), 64 << 20))

    flops = 2 * B_pad * sum(pdims[l] * pdims[l + 1] for l in range(n_layers))
    transcendentals = B_pad * sum(pdims[1:-1])
    bytes_accessed = (x_pad.size * x_pad.dtype.itemsize
                      + w_bytes
                      + sum(b.size * b.dtype.itemsize for b in prep.biases)
                      + B_pad * pdims[-1] * jnp.dtype(x.dtype).itemsize)

    kernel = functools.partial(_mlp_kernel, n_layers=n_layers)
    out_pad = pl.pallas_call(
        kernel,
        out_shape=jax.ShapeDtypeStruct((B_pad, pdims[-1]), x.dtype),
        grid_spec=pltpu.PrefetchScalarGridSpec(
            num_scalar_prefetch=0,
            grid=(B_pad // tb,),
            in_specs=in_specs,
            out_specs=out_spec,
        ),
        compiler_params=pltpu.CompilerParams(
            dimension_semantics=("parallel",),
            vmem_limit_bytes=vmem_limit,
        ),
        cost_estimate=pl.CostEstimate(
            flops=int(flops),
            transcendentals=int(transcendentals),
            bytes_accessed=int(bytes_accessed),
        ),
    )(x_pad, *[a for l in range(n_layers)
               for a in (prep.weights[l], prep.biases[l])])

    return out_pad[:B, :prep.dims[-1]]


# --------------------------------------------------------------------------
# Parameter init (mirrors torch.nn.Linear) and pure-JAX reference
# --------------------------------------------------------------------------
def init_mlp_params(key, layer_sizes: List[int], dtype=jnp.float32):
    params = []
    for i in range(len(layer_sizes) - 1):
        d_in, d_out = layer_sizes[i], layer_sizes[i + 1]
        key, kw, kb = jax.random.split(key, 3)
        bound = 1.0 / jnp.sqrt(d_in)
        w = jax.random.uniform(kw, (d_in, d_out), dtype, -bound, bound)
        b = jax.random.uniform(kb, (d_out,), dtype, -bound, bound)
        params.append((w, b))
    return params


def mlp_reference(x, params):
    n = len(params)
    for idx, (w, b) in enumerate(params):
        x = x @ w + b
        if idx < n - 1:
            x = jnp.tanh(x)
    return x


if __name__ == "__main__":
    layer_sizes = [16, 32, 32, 8]
    batch = 512  # -> 2 batch tiles of 256: both v7x TensorCores get work

    key = jax.random.PRNGKey(0)
    kx, kp = jax.random.split(key)
    x = jax.random.normal(kx, (batch, layer_sizes[0]), jnp.float32)
    params = init_mlp_params(kp, layer_sizes)
    ref = mlp_reference(x, params)

    # f32 MXU path: matches the f32 reference tightly.
    prep_f32 = prepare_mlp_params(params, layer_sizes[0], jnp.float32)
    out = jax.block_until_ready(mlp_forward(x, prep_f32))
    assert out.shape == (batch, layer_sizes[-1])
    assert jnp.allclose(out, ref, atol=1e-5, rtol=1e-5)

    # bf16 MXU path (v5e/v6e/v7x throughput), f32 accumulation + f32 tanh:
    # per-layer activation rounding -> loose tolerance.
    prep_bf16 = prepare_mlp_params(params, layer_sizes[0], jnp.bfloat16)
    out_bf16 = jax.block_until_ready(mlp_forward(x, prep_bf16))
    assert out_bf16.shape == (batch, layer_sizes[-1])
    assert jnp.allclose(out_bf16, ref, atol=5e-2, rtol=5e-2)

    print("KERNEL_OK")
</pallas_src>

<mosaic_0001>
module attributes {stable_mosaic.version = 11 : i64} {
  func.func @_mlp_kernel(%arg0: i32, %arg1: memref<256x128xf32, #tpu.memory_space<vmem>>, %arg2: memref<128x128xf32, #tpu.memory_space<vmem>>, %arg3: memref<1x128xf32, #tpu.memory_space<vmem>>, %arg4: memref<128x128xf32, #tpu.memory_space<vmem>>, %arg5: memref<1x128xf32, #tpu.memory_space<vmem>>, %arg6: memref<128x128xf32, #tpu.memory_space<vmem>>, %arg7: memref<1x128xf32, #tpu.memory_space<vmem>>, %arg8: memref<256x128xf32, #tpu.memory_space<vmem>>) attributes {dimension_semantics = [#tpu.dimension_semantics<parallel>], iteration_bounds = array<i64: 2>, scalar_prefetch = 0 : i64, scratch_operands = 0 : i64, tpu.core_type = #tpu.core_type<tc>, window_params = [{transform_indices = @transform_0, window_bounds = array<i64: 256, 128>}, {pipeline_mode = #tpu.pipeline_mode<synchronous>, transform_indices = @transform_1, window_bounds = array<i64: 128, 128>}, {pipeline_mode = #tpu.pipeline_mode<synchronous>, transform_indices = @transform_2, window_bounds = array<i64: 1, 128>}, {pipeline_mode = #tpu.pipeline_mode<synchronous>, transform_indices = @transform_3, window_bounds = array<i64: 128, 128>}, {pipeline_mode = #tpu.pipeline_mode<synchronous>, transform_indices = @transform_4, window_bounds = array<i64: 1, 128>}, {pipeline_mode = #tpu.pipeline_mode<synchronous>, transform_indices = @transform_5, window_bounds = array<i64: 128, 128>}, {pipeline_mode = #tpu.pipeline_mode<synchronous>, transform_indices = @transform_6, window_bounds = array<i64: 1, 128>}, {transform_indices = @transform_7, window_bounds = array<i64: 256, 128>}]} {
    %c0 = arith.constant 0 : index
    %c0_0 = arith.constant 0 : index
    %0 = vector.load %arg1[%c0, %c0_0] : memref<256x128xf32, #tpu.memory_space<vmem>>, vector<256x128xf32>
    %c0_1 = arith.constant 0 : index
    %c0_2 = arith.constant 0 : index
    %1 = vector.load %arg2[%c0_1, %c0_2] : memref<128x128xf32, #tpu.memory_space<vmem>>, vector<128x128xf32>
    %c0_3 = arith.constant 0 : index
    %c0_4 = arith.constant 0 : index
    %2 = vector.load %arg3[%c0_3, %c0_4] : memref<1x128xf32, #tpu.memory_space<vmem>>, vector<1x128xf32>
    %cst = arith.constant dense<0.000000e+00> : vector<256x128xf32>
    %3 = tpu.matmul %0, %1, %cst {dimension_numbers = #tpu.dot_dimension_numbers<[1], [0], [0], [1], [0, 0, 1, 1], [], []>} : vector<256x128xf32>, vector<128x128xf32>, vector<256x128xf32> -> vector<256x128xf32>
    %4 = vector.broadcast %2 : vector<1x128xf32> to vector<256x128xf32>
    %5 = arith.addf %3, %4 : vector<256x128xf32>
    %6 = math.tanh %5 : vector<256x128xf32>
    %c0_5 = arith.constant 0 : index
    %c0_6 = arith.constant 0 : index
    %7 = vector.load %arg4[%c0_5, %c0_6] : memref<128x128xf32, #tpu.memory_space<vmem>>, vector<128x128xf32>
    %c0_7 = arith.constant 0 : index
    %c0_8 = arith.constant 0 : index
    %8 = vector.load %arg5[%c0_7, %c0_8] : memref<1x128xf32, #tpu.memory_space<vmem>>, vector<1x128xf32>
    %cst_9 = arith.constant dense<0.000000e+00> : vector<256x128xf32>
    %9 = tpu.matmul %6, %7, %cst_9 {dimension_numbers = #tpu.dot_dimension_numbers<[1], [0], [0], [1], [0, 0, 1, 1], [], []>} : vector<256x128xf32>, vector<128x128xf32>, vector<256x128xf32> -> vector<256x128xf32>
    %10 = vector.broadcast %8 : vector<1x128xf32> to vector<256x128xf32>
    %11 = arith.addf %9, %10 : vector<256x128xf32>
    %12 = math.tanh %11 : vector<256x128xf32>
    %c0_10 = arith.constant 0 : index
    %c0_11 = arith.constant 0 : index
    %13 = vector.load %arg6[%c0_10, %c0_11] : memref<128x128xf32, #tpu.memory_space<vmem>>, vector<128x128xf32>
    %c0_12 = arith.constant 0 : index
    %c0_13 = arith.constant 0 : index
    %14 = vector.load %arg7[%c0_12, %c0_13] : memref<1x128xf32, #tpu.memory_space<vmem>>, vector<1x128xf32>
    %cst_14 = arith.constant dense<0.000000e+00> : vector<256x128xf32>
    %15 = tpu.matmul %12, %13, %cst_14 {dimension_numbers = #tpu.dot_dimension_numbers<[1], [0], [0], [1], [0, 0, 1, 1], [], []>} : vector<256x128xf32>, vector<128x128xf32>, vector<256x128xf32> -> vector<256x128xf32>
    %16 = vector.broadcast %14 : vector<1x128xf32> to vector<256x128xf32>
    %17 = arith.addf %15, %16 : vector<256x128xf32>
    %c0_15 = arith.constant 0 : index
    %c0_16 = arith.constant 0 : index
    %18 = vector.load %arg8[%c0_15, %c0_16] : memref<256x128xf32, #tpu.memory_space<vmem>>, vector<256x128xf32>
    tpu.vector_store %arg8[%c0_15, %c0_16], %17 {strides = array<i32>} : memref<256x128xf32, #tpu.memory_space<vmem>>, vector<256x128xf32>,
    return
  }
  func.func @transform_0(%arg0: i32) -> (i32, i32) {
    %c0_i32 = arith.constant 0 : i32
    %c0_i32_0 = arith.constant 0 : i32
    return %arg0, %c0_i32 : i32, i32
  }
  func.func @transform_1(%arg0: i32) -> (i32, i32) {
    %c0_i32 = arith.constant 0 : i32
    %c0_i32_0 = arith.constant 0 : i32
    %c0_i32_1 = arith.constant 0 : i32
    return %c0_i32, %c0_i32_0 : i32, i32
  }
  func.func @transform_2(%arg0: i32) -> (i32, i32) {
    %c0_i32 = arith.constant 0 : i32
    %c0_i32_0 = arith.constant 0 : i32
    %c0_i32_1 = arith.constant 0 : i32
    return %c0_i32, %c0_i32_0 : i32, i32
  }
  func.func @transform_3(%arg0: i32) -> (i32, i32) {
    %c0_i32 = arith.constant 0 : i32
    %c0_i32_0 = arith.constant 0 : i32
    %c0_i32_1 = arith.constant 0 : i32
    return %c0_i32, %c0_i32_0 : i32, i32
  }
  func.func @transform_4(%arg0: i32) -> (i32, i32) {
    %c0_i32 = arith.constant 0 : i32
    %c0_i32_0 = arith.constant 0 : i32
    %c0_i32_1 = arith.constant 0 : i32
    return %c0_i32, %c0_i32_0 : i32, i32
  }
  func.func @transform_5(%arg0: i32) -> (i32, i32) {
    %c0_i32 = arith.constant 0 : i32
    %c0_i32_0 = arith.constant 0 : i32
    %c0_i32_1 = arith.constant 0 : i32
    return %c0_i32, %c0_i32_0 : i32, i32
  }
  func.func @transform_6(%arg0: i32) -> (i32, i32) {
    %c0_i32 = arith.constant 0 : i32
    %c0_i32_0 = arith.constant 0 : i32
    %c0_i32_1 = arith.constant 0 : i32
    return %c0_i32, %c0_i32_0 : i32, i32
  }
  func.func @transform_7(%arg0: i32) -> (i32, i32) {
    %c0_i32 = arith.constant 0 : i32
    %c0_i32_0 = arith.constant 0 : i32
    return %arg0, %c0_i32 : i32, i32
  }
}

</mosaic_0001>

<bundles_post_ra>
// kernel: tpu_custom_call.1
= control target key start
LH: loop header
LB: loop body
LE: loop exit
PB: predicated region body
PF: predicated region fallthrough
CT: control target
= control target key end

     0   :  { %s2618_s0 = inlined_call_operand.hbm [shape: f32[512,128], index: 0, kind: input, shape index: {}]   ;;  %s2619_s1 = inlined_call_operand.hbm [shape: f32[128,128], index: 1, kind: input, shape index: {}]   ;;  %s2620_s2 = inlined_call_operand.vmem [shape: f32[1,128], index: 2, kind: input, shape index: {}]   ;;  %s2621_s3 = inlined_call_operand.hbm [shape: f32[128,128], index: 3, kind: input, shape index: {}]   ;;  %s2622_s4 = inlined_call_operand.vmem [shape: f32[1,128], index: 4, kind: input, shape index: {}]   ;;  %s2623_s5 = inlined_call_operand.hbm [shape: f32[128,128], index: 5, kind: input, shape index: {}]   ;;  %s2624_s6 = inlined_call_operand.vmem [shape: f32[1,128], index: 6, kind: input, shape index: {}]   ;;  %s2625_s7 = inlined_call_operand.hbm [shape: f32[512,128], index: 7, kind: output, shape index: {}]  }
   0x1   :  { %2632 = sst [smem:[#allocation15_spill]] %s2619_s1 }
   0x2   :  { %12 = vsyncpa [#allocation3], 0 }
   0x3   :  { %14 = vsyncpa [#allocation3 + $0x1], 0 }
   0x4   :  { %15 = vsyncpa [#allocation6], 0 }
   0x5   :  { %16 = vsyncpa [#allocation9], 0 }
   0x6   :  { %17 = vsyncpa [#allocation4], 0 }
   0x7   :  { %19 = vsyncpa [#allocation4 + $0x1], 0  ;;  %s2210_s24 = smov 0   ;;  %s2212_s25 = smov 0  }
   0x8   :  { %s2214_s26 = smov 0   ;;  %s2216_s27 = smov 0  }
   0x9 LB: > { %s2231_s28 = sadd.s32 4294967295, %s2159_s27   ;;  %s1331_s29 = sadd.s32 4294967294, %s2159_s27   ;;  %s2159_s27 = sphi %s2216_s27, %s2654_s27   ;;  %s2155_s26 = sphi %s2214_s26, %s2653_s26   ;;  %s2151_s25 = sphi %s2212_s25, %s2652_s25   ;;  %s2147_s24 = sphi %s2210_s24, %s2651_s24  }
   0xa   : > { %p45_p0 = scmp.ne.s32.totalorder %s2151_s25, %s2147_s24  ;;  %p2626_p1 = scmp.eq.s32.totalorder %s2231_s28, 0 }
   0xb   : > { %p195_p2 = scmp.eq.s32.totalorder %s2231_s28, 1  ;;  %p201_p3 = scmp.eq.s32.totalorder %s1331_s29, 1 }
   0xc   : > { %p2240_p4 = por %p2626_p1, %p45_p0  ;;  %p1332_p5 = scmp.ge.s32.totalorder %s2159_s27, 1 }
   0xd   : > { %p2245_p6 = por %p201_p3, %p45_p0  ;;  %p208_p7 = scmp.lt.s32.totalorder %s2159_s27, 3 }
   0xe   : > { %s2633_s30 = scalar_select %p2240_p4, 1, 0 }
   0xf   : > { %s2634_s8 = scalar_select %p2245_p6, 1, 0 }
  0x10   : > { %p2250_p8 = pnand %p1332_p5, %p208_p7  ;;  %s2161_s10 = smov [#allocation5]  }
  0x11   : > { %s220_s11 = sshll.u32 %s2161_s10, 4  ;;  %s2162_s13 = smov [#allocation7]   ;;  %s221_s11 = int_to_ptr.vmem [resolvable:$true] %s220_s11 }
  0x12   : > { %s2635_s9 = scalar_select %p2250_p8, 1, 0 }
  0x13   : > { %p1788_p9 = pneg %p2250_p8  ;;  %s236_s14 = sshll.u32 %s2162_s13, 4  ;;  %s237_s14 = int_to_ptr.vmem [resolvable:$true] %s236_s14 }
  0x14   : > { %s2163_s15 = smov [#allocation8]   ;;  %s1992_s17 = scalar_lea.vmem %s221_s11, 2048 }
  0x15   : > { %p2259_p11 = pnand %p1788_p9, %p2626_p1  ;;  %s252_s16 = sshll.u32 %s2163_s15, 4  ;;  %s253_s16 = int_to_ptr.vmem [resolvable:$true] %s252_s16 }
  0x16   : > { %p1993_p13 = scmp.ne.s32.totalorder %s221_s11, %s1992_s17  ;;  %p2000_p5 = scmp.lt.s32.totalorder %s221_s11, %s221_s11 }
  0x17   : > { %p1983_p12 = pneg %p2259_p11  ;;  %p2001_p7 = scmp.lt.s32.totalorder %s1992_s17, %s1992_s17 }
  0x19   : > { %p1995_p0 = pnand %p1993_p13, %p1983_p12  ;;  %p2002_p9 = por %p2001_p7, %p2000_p5 }
  0x1b   : > { %p1996_p3 = pneg %p1995_p0 }
  0x1d   : > { %p2003_p10 = pnand %p2002_p9, %p1996_p3 }
  0x1f   : > { %2006 = shalt.err (!%p2003_p10)
}
  0x20   : > { %s2627_s18 = smov 128   ;;  %s2628_s19 = smov 8  }
  0x21   : > { %s2637_s1 = sld [smem:[#allocation15_spill]]  ;;  %s2018_s22 = scalar_lea.vmem %s237_s14, 2048 }
  0x22   : > { %p2019_p13 = scmp.ne.s32.totalorder %s237_s14, %s2018_s22  ;;  %p2026_p3 = scmp.lt.s32.totalorder %s237_s14, %s237_s14 }
  0x23   : > { %p2027_p10 = scmp.lt.s32.totalorder %s2018_s22, %s2018_s22 }
  0x24   : > { %p2021_p0 = pnand %p2019_p13, %p1983_p12 }
  0x25   : > { %p2028_p7 = por %p2027_p10, %p2026_p3 }
  0x26   : > { %p2022_p5 = pneg %p2021_p0 }
  0x27   : > { %1791 = dma.hbm_to_vmem [thread:$0]  (!%p2259_p11), %s2637_s1, 2048, %s221_s11, [#allocation6], %s2627_s18, %s2627_s18, %s2628_s19  }
  0x28   : > { %p2029_p9 = pnand %p2028_p7, %p2022_p5 }
  0x2a   : > { %2032 = shalt.err (!%p2029_p9)
}
  0x2b   : > { %1794 = dma.hbm_to_vmem [thread:$0]  (!%p2259_p11), %s2621_s3, 2048, %s237_s14, [#allocation6], %s2627_s18, %s2627_s18, %s2628_s19  }
  0x2c   : > { %s2044_s10 = scalar_lea.vmem %s253_s16, 2048  ;;  %p2052_p3 = scmp.lt.s32.totalorder %s253_s16, %s253_s16 }
  0x2d   : > { %p2045_p1 = scmp.ne.s32.totalorder %s253_s16, %s2044_s10  ;;  %p2053_p5 = scmp.lt.s32.totalorder %s2044_s10, %s2044_s10 }
  0x2f   : > { %p2047_p13 = pnand %p2045_p1, %p1983_p12  ;;  %p2054_p10 = por %p2053_p5, %p2052_p3 }
  0x31   : > { %p2048_p0 = pneg %p2047_p13 }
  0x33   : > { %p2055_p7 = pnand %p2054_p10, %p2048_p0 }
  0x35   : > { %2058 = shalt.err (!%p2055_p7)
}
  0x36   : > { %1797 = dma.hbm_to_vmem [thread:$0]  (!%p2259_p11), %s2623_s5, 2048, %s253_s16, [#allocation9], %s2627_s18, %s2627_s18, %s2628_s19  }
  0x37   : > { %s2299_s14 = sadd.s32 1, %s2159_s27   ;;  %s32_s15 = sadd.s32 1, %s2155_s26 }
  0x38   : > { %s29_s12 = ssub.s32 %s2159_s27, %s2299_s14  ;;  %p39_p12 = scmp.ne.s32.totalorder %s2155_s26, %s2151_s25 }
  0x39   : > { %p30_p1 = scmp.eq.s32.totalorder %s29_s12, 0  ;;  %p40_p9 = scmp.eq.s32.totalorder %s2159_s27, 0 }
  0x3a   : > { %p1809_p13 = scmp.lt.s32.totalorder %s2159_s27, 2  ;;  %p2313_p3 = por %p195_p2, %p39_p12 }
  0x3b   : > { %s2309_s17 = scalar_select %p30_p1, %s2155_s26, %s32_s15  }
  0x3c   : > { %p41_p0 = por %p40_p9, %p39_p12  ;;  %s269_s21 = sand.u32 1, %s2155_s26  }
  0x3d   : > { %s2638_s20 = scalar_select %p2313_p3, 1, 0 }
  0x3e   : > { %s1354_s22 = sshll.u32 %s2159_s27, 12  ;;  %s1337_s16 = sshll.u32 %s269_s21, 8 }
  0x3f   : > { %s2322_s10 = scalar_lea.hbm %s2618_s0, %s1354_s22  ;;  %s273_s11 = scalar_lea.vmem [#allocation2], %s1337_s16 }
  0x40   : > { %s280_s13 = sshll.u32 %s273_s11, 4  ;;  %p2324_p11 = pnand %p1809_p13, %p41_p0  ;;  %s2328_s13 = int_to_ptr.vmem [resolvable:$true] %s280_s13 }
  0x41   : > { %s2330_s15 = scalar_lea.sflag [#allocation3], %s269_s21  ;;  %s2059_s18 = scalar_lea.hbm %s2322_s10, 4096 }
  0x42   : > { %p2060_p2 = scmp.ne.s32.totalorder %s2322_s10, %s2059_s18  ;;  %p2061_p5 = pneg %p2324_p11 }
  0x43   : > { %s2064_s16 = scalar_lea.hbm %s2618_s0, 8192  ;;  %p2065_p1 = scmp.lt.s32.totalorder %s2322_s10, %s2618_s0 }
  0x44   : > { %p2062_p10 = pnand %p2061_p5, %p2060_p2  ;;  %p2066_p12 = scmp.lt.s32.totalorder %s2064_s16, %s2059_s18 }
  0x46   : > { %p2063_p7 = pneg %p2062_p10  ;;  %p2067_p9 = por %p2066_p12, %p2065_p1 }
  0x48   : > { %p2068_p13 = pnand %p2067_p9, %p2063_p7 }
  0x4a   : > { %2071 = shalt.err (!%p2068_p13)
}
  0x4b   : > { %s2072_s21 = scalar_lea.vmem %s2328_s13, 4096  ;;  %s2166_s19 = smov [#allocation2]  }
  0x4c   : > { %p2073_p0 = scmp.ne.s32.totalorder %s2328_s13, %s2072_s21  ;;  %s2077_s1 = sshll.u32 %s2166_s19, 4  ;;  %s2078_s1 = int_to_ptr.vmem [resolvable:$false] %s2077_s1 }
  0x4d   : > { %s2079_s22 = scalar_lea.vmem %s2078_s1, 8192  ;;  %p2080_p10 = scmp.lt.s32.totalorder %s2328_s13, %s2078_s1 }
  0x4e   : > { %p2075_p6 = pnand %p2073_p0, %p2061_p5  ;;  %p2081_p3 = scmp.lt.s32.totalorder %s2079_s22, %s2072_s21 }
  0x50   : > { %p2076_p2 = pneg %p2075_p6  ;;  %p2082_p4 = por %p2081_p3, %p2080_p10 }
  0x52   : > { %p2083_p8 = pnand %p2082_p4, %p2076_p2 }
  0x54   : > { %2086 = shalt.err (!%p2083_p8)
}
  0x55   : > { %s2640_s18 = smov 8   ;;  %s2641_s23 = smov 128  }
  0x56   : > { %1801 = dma.hbm_to_vmem [thread:$0]  (!%p2324_p11), %s2322_s10, 4096, %s2328_s13, %s2330_s15, %s2641_s23, %s2641_s23, %s2640_s18  }
  0x57   : > { %p2642_p6 = scmp.ne.s32.totalorder %s2635_s9, 0 }
  0x58   : > { %s2357_s19 = sand.u32 (!%p2642_p6), 1, %s2151_s25   ;;  %p2643_p4 = scmp.ne.s32.totalorder (!%p2642_p6), %s2633_s30, 0 }
  0x59   : > { %292 = sbr.rel (%p2642_p6) target bundleno = 830 (0x33e), region = 48  ;;  %s1341_s1 = sshll.u32 (!%p2642_p6), %s2357_s19, 8 }
  0x5a   : > { %s295_s16 = scalar_lea.sflag (!%p2642_p6), [#allocation3], %s2357_s19  ;;  %s2363_s12 = scalar_lea.vmem (!%p2642_p6), [#allocation2], %s1341_s1 }
  0x5e   : > { %2130 = dma.done.wait (%p2643_p4), %s295_s16, 4096  }
  0x5f   : > { %2132 = vsyncadd (%p2643_p4), %s295_s16, 4294963200  ;;  %p2644_p8 = scmp.eq.s32.totalorder %s2231_s28, 0 }
  0x61   : > { %2134 = dma.done.wait (%p2644_p8), [#allocation6], 4096   ;;  %p2645_p3 = pmov %p2644_p8 }
  0x63   : > { %2136 = vsyncadd (%p2645_p3), [#allocation6], 4294963200  ;;  %p2646_p11 = pmov %p2645_p3 }
  0x64   : > { %p2647_p5 = pmov %p2645_p3 }
  0x65   : > { %2138 = dma.done.wait (%p2646_p11), [#allocation9], 2048  }
  0x66   : > { %2140 = vsyncadd (%p2647_p5), [#allocation9], 4294965248  ;;  %v390_v0 = vld [vmem:[#allocation5 + $0x78] sm:$0xff]  ;;  %v389_v1 = vld [vmem:[#allocation5 + $0x70] sm:$0xff]  ;;  %s2503_s11 = scalar_lea.vmem [#allocation10], %s1341_s1  ;;  %s1355_s21 = sshll.u32 %s2231_s28, 12 }
  0x67   : > { %1500 = vmatprep.subr.mxu0 %v390_v0  ;;  %1740 = vmatprep.subr.mxu1 %v390_v0  ;;  %v388_v2 = vld [vmem:[#allocation5 + $0x68] sm:$0xff]  ;;  %v387_v3 = vld [vmem:[#allocation5 + $0x60] sm:$0xff]  ;;  %v386_v5 = vld [vmem:[#allocation5 + $0x58] sm:$0xff]  ;;  %s1229_s22 = sshll.u32 %s2503_s11, 4  ;;  %s2570_s1 = scalar_lea.hbm %s2625_s7, %s1355_s21  ;;  %s2572_s22 = int_to_ptr.vmem [resolvable:$true] %s1229_s22 }
  0x68   : > { %1501 = vmatpush3.msra.mxu0 %v390_v0  ;;  %1756 = vmatpush3.msra.mxu1 %v390_v0  ;;  %v343_v4 = vld [vmem:[%s2363_s12] sm:$0xff]  ;;  %v385_v6 = vld [vmem:[#allocation5 + $0x50] sm:$0xff]  ;;  %v384_v7 = vld [vmem:[#allocation5 + $0x48] sm:$0xff]  ;;  %s1216_s28 = scalar_lea.sflag [#allocation4], %s2357_s19  ;;  %s2087_s16 = scalar_lea.vmem %s2572_s22, 4096 }
  0x69   : > { %1502 = vmatprep.subr.mxu0 %v389_v1  ;;  %1741 = vmatprep.subr.mxu1 %v389_v1  ;;  %v383_v8 = vld [vmem:[#allocation5 + $0x40] sm:$0xff]  ;;  %v382_v9 = vld [vmem:[#allocation5 + $0x38] sm:$0xff]  ;;  %v381_v10 = vld [vmem:[#allocation5 + $0x30] sm:$0xff]  ;;  %p2088_p7 = scmp.ne.s32.totalorder %s2572_s22, %s2087_s16  ;;  %p2648_p1 = scmp.ne.s32.totalorder %s2638_s20, 0 }
  0x6a   : > { %1503 = vmatpush3.msra.mxu0 %v389_v1  ;;  %1757 = vmatpush3.msra.mxu1 %v389_v1  ;;  %v380_v11 = vld [vmem:[#allocation5 + $0x28] sm:$0xff]  ;;  %v379_v12 = vld [vmem:[#allocation5 + $0x20] sm:$0xff]  ;;  %v378_v13 = vld [vmem:[#allocation5 + $0x18] sm:$0xff] }
  0x6b   : > { %1504 = vmatprep.subr.mxu0 %v388_v2  ;;  %1742 = vmatprep.subr.mxu1 %v388_v2  ;;  %v377_v14 = vld [vmem:[#allocation5 + $0x10] sm:$0xff]  ;;  %v376_v15 = vld [vmem:[#allocation5 + $0x8] sm:$0xff]  ;;  %v375_v16 = vld [vmem:[#allocation5] sm:$0xff]  ;;  %p2089_p12 = pnand %p2088_p7, %p2648_p1 }
  0x6c   : > { %1505 = vmatpush3.msra.mxu0 %v388_v2  ;;  %1532 = vmatprep.mubr.f32.mxu0 %v343_v4  ;;  %v344_v17 = vld [vmem:[%s2363_s12 + $0x8] sm:$0xff]  ;;  %v345_v18 = vld [vmem:[%s2363_s12 + $0x10] sm:$0xff]  ;;  %v359_v19 = vld [vmem:[%s2363_s12 + $0x80] sm:$0xff] }
  0x6d   : > { %1506 = vmatprep.subr.mxu0 %v387_v3  ;;  %1758 = vmatpush3.msra.mxu1 %v388_v2  ;;  %v360_v20 = vld [vmem:[%s2363_s12 + $0x88] sm:$0xff]  ;;  %v670_v21 = vld [vmem:[#allocation7 + $0x78] sm:$0xff]  ;;  %v361_v22 = vld [vmem:[%s2363_s12 + $0x90] sm:$0xff]  ;;  %p2090_p9 = pneg %p2089_p12 }
  0x6e   : > { %1507 = vmatpush3.msra.mxu0 %v387_v3  ;;  %1743 = vmatprep.subr.mxu1 %v387_v3  ;;  %v346_v23 = vld [vmem:[%s2363_s12 + $0x18] sm:$0xff]  ;;  %v669_v24 = vld [vmem:[#allocation7 + $0x70] sm:$0xff]  ;;  %v347_v25 = vld [vmem:[%s2363_s12 + $0x20] sm:$0xff] }
  0x6f   : > { %1508 = vmatprep.subr.mxu0 %v386_v5  ;;  %1759 = vmatpush3.msra.mxu1 %v387_v3  ;;  %v362_v26 = vld [vmem:[%s2363_s12 + $0x98] sm:$0xff]  ;;  %v668_v27 = vld [vmem:[#allocation7 + $0x68] sm:$0xff]  ;;  %v363_v28 = vld [vmem:[%s2363_s12 + $0xa0] sm:$0xff] }
  0x70   : > { %1509 = vmatpush3.msra.mxu0 %v386_v5  ;;  %1744 = vmatprep.subr.mxu1 %v386_v5  ;;  %v348_v29 = vld [vmem:[%s2363_s12 + $0x28] sm:$0xff]  ;;  %v667_v30 = vld [vmem:[#allocation7 + $0x60] sm:$0xff]  ;;  %v349_v31 = vld [vmem:[%s2363_s12 + $0x30] sm:$0xff] }
  0x71   : > { %1510 = vmatprep.subr.mxu0 %v385_v6  ;;  %1760 = vmatpush3.msra.mxu1 %v386_v5  ;;  %v364_v32 = vld [vmem:[%s2363_s12 + $0xa8] sm:$0xff]  ;;  %v666_v33 = vld [vmem:[#allocation7 + $0x58] sm:$0xff]  ;;  %v365_v34 = vld [vmem:[%s2363_s12 + $0xb0] sm:$0xff] }
  0x72   : > { %1511 = vmatpush3.msra.mxu0 %v385_v6  ;;  %1745 = vmatprep.subr.mxu1 %v385_v6  ;;  %v350_v35 = vld [vmem:[%s2363_s12 + $0x38] sm:$0xff]  ;;  %v665_v36 = vld [vmem:[#allocation7 + $0x50] sm:$0xff]  ;;  %v351_v37 = vld [vmem:[%s2363_s12 + $0x40] sm:$0xff] }
  0x73   : > { %1512 = vmatprep.subr.mxu0 %v384_v7  ;;  %1761 = vmatpush3.msra.mxu1 %v385_v6  ;;  %v366_v38 = vld [vmem:[%s2363_s12 + $0xb8] sm:$0xff]  ;;  %v664_v39 = vld [vmem:[#allocation7 + $0x48] sm:$0xff]  ;;  %v367_v40 = vld [vmem:[%s2363_s12 + $0xc0] sm:$0xff] }
  0x74   : > { %1513 = vmatpush3.msra.mxu0 %v384_v7  ;;  %1746 = vmatprep.subr.mxu1 %v384_v7  ;;  %v352_v41 = vld [vmem:[%s2363_s12 + $0x48] sm:$0xff]  ;;  %v353_v42 = vld [vmem:[%s2363_s12 + $0x50] sm:$0xff]  ;;  %v354_v45 = vld [vmem:[%s2363_s12 + $0x58] sm:$0xff] }
  0x75   : > { %1514 = vmatprep.subr.mxu0 %v383_v8  ;;  %1762 = vmatpush3.msra.mxu1 %v384_v7  ;;  %v368_v43 = vld [vmem:[%s2363_s12 + $0xc8] sm:$0xff]  ;;  %v369_v44 = vld [vmem:[%s2363_s12 + $0xd0] sm:$0xff]  ;;  %v355_v46 = vld [vmem:[%s2363_s12 + $0x60] sm:$0xff] }
  0x76   : > { %1515 = vmatpush3.msra.mxu0 %v383_v8  ;;  %1747 = vmatprep.subr.mxu1 %v383_v8  ;;  %v370_v47 = vld [vmem:[%s2363_s12 + $0xd8] sm:$0xff]  ;;  %v371_v48 = vld [vmem:[%s2363_s12 + $0xe0] sm:$0xff]  ;;  %v356_v49 = vld [vmem:[%s2363_s12 + $0x68] sm:$0xff] }
  0x77   : > { %1516 = vmatprep.subr.mxu0 %v382_v9  ;;  %1763 = vmatpush3.msra.mxu1 %v383_v8  ;;  %v357_v50 = vld [vmem:[%s2363_s12 + $0x70] sm:$0xff]  ;;  %v372_v51 = vld [vmem:[%s2363_s12 + $0xe8] sm:$0xff]  ;;  %v358_v53 = vld [vmem:[%s2363_s12 + $0x78] sm:$0xff] }
  0x78   : > { %1517 = vmatpush3.msra.mxu0 %v382_v9  ;;  %1748 = vmatprep.subr.mxu1 %v382_v9  ;;  %v373_v52 = vld [vmem:[%s2363_s12 + $0xf0] sm:$0xff]  ;;  %v374_v54 = vld [vmem:[%s2363_s12 + $0xf8] sm:$0xff]  ;;  %v663_v55 = vld [vmem:[#allocation7 + $0x40] sm:$0xff]  ;;  %s2167_s12 = smov [#allocation10]  }
  0x79   : > { %1518 = vmatprep.subr.mxu0 %v381_v10  ;;  %1764 = vmatpush3.msra.mxu1 %v382_v9  ;;  %v662_v56 = vld [vmem:[#allocation7 + $0x38] sm:$0xff]  ;;  %v661_v57 = vld [vmem:[#allocation7 + $0x30] sm:$0xff]  ;;  %v660_v58 = vld [vmem:[#allocation7 + $0x28] sm:$0xff]  ;;  %s2091_s30 = sshll.u32 %s2167_s12, 4  ;;  %s2092_s30 = int_to_ptr.vmem [resolvable:$false] %s2091_s30 }
  0x7a   : > { %1519 = vmatpush3.msra.mxu0 %v381_v10  ;;  %1749 = vmatprep.subr.mxu1 %v381_v10  ;;  %v659_v59 = vld [vmem:[#allocation7 + $0x20] sm:$0xff]  ;;  %v658_v60 = vld [vmem:[#allocation7 + $0x18] sm:$0xff]  ;;  %v657_v61 = vld [vmem:[#allocation7 + $0x10] sm:$0xff]  ;;  %s2093_s9 = scalar_lea.vmem %s2092_s30, 8192  ;;  %p2094_p13 = scmp.lt.s32.totalorder %s2572_s22, %s2092_s30 }
  0x7b   : > { %1520 = vmatprep.subr.mxu0 %v380_v11  ;;  %1765 = vmatpush3.msra.mxu1 %v381_v10  ;;  %v656_v62 = vld [vmem:[#allocation7 + $0x8] sm:$0xff]  ;;  %v655_v63 = vld [vmem:[#allocation7] sm:$0xff]  ;;  %v950_v0 = vld [vmem:[#allocation8 + $0x78] sm:$0xff]  ;;  %p2095_p0 = scmp.lt.s32.totalorder %s2093_s9, %s2087_s16 }
  0x7c   : > { %1521 = vmatpush3.msra.mxu0 %v380_v11  ;;  %1750 = vmatprep.subr.mxu1 %v380_v11  ;;  %v949_v1 = vld [vmem:[#allocation8 + $0x70] sm:$0xff]  ;;  %v948_v2 = vld [vmem:[#allocation8 + $0x68] sm:$0xff]  ;;  %v947_v3 = vld [vmem:[#allocation8 + $0x60] sm:$0xff] }
  0x7d   : > { %1522 = vmatprep.subr.mxu0 %v379_v12  ;;  %1766 = vmatpush3.msra.mxu1 %v380_v11  ;;  %v946_v4 = vld [vmem:[#allocation8 + $0x58] sm:$0xff]  ;;  %v945_v5 = vld [vmem:[#allocation8 + $0x50] sm:$0xff]  ;;  %v944_v6 = vld [vmem:[#allocation8 + $0x48] sm:$0xff]  ;;  %p2096_p2 = por %p2095_p0, %p2094_p13 }
  0x7e   : > { %1523 = vmatpush3.msra.mxu0 %v379_v12  ;;  %1751 = vmatprep.subr.mxu1 %v379_v12  ;;  %v2412_v7 = vld [vmem:[%s2620_s2] ss:$0 sm:$0xff] }
  0x7f   : > { %1524 = vmatprep.subr.mxu0 %v378_v13  ;;  %1767 = vmatpush3.msra.mxu1 %v379_v12  ;;  %p2097_p10 = pnand %p2096_p2, %p2090_p9 }
  0x80   : > { %1525 = vmatpush3.msra.mxu0 %v378_v13  ;;  %1752 = vmatprep.subr.mxu1 %v378_v13 }
  0x81   : > { %1526 = vmatprep.subr.mxu0 %v377_v14  ;;  %1768 = vmatpush3.msra.mxu1 %v378_v13 }
  0x82   : > { %1527 = vmatpush3.msra.mxu0 %v377_v14  ;;  %1753 = vmatprep.subr.mxu1 %v377_v14 }
  0x83   : > { %1528 = vmatprep.subr.mxu0 %v376_v15  ;;  %1769 = vmatpush3.msra.mxu1 %v377_v14 }
  0x84   : > { %1529 = vmatpush3.msra.mxu0 %v376_v15  ;;  %1754 = vmatprep.subr.mxu1 %v376_v15 }
  0x85   : > { %1530 = vmatprep.subr.mxu0 %v375_v16  ;;  %1770 = vmatpush3.msra.mxu1 %v376_v15 }
  0x86   : > { %1531 = vmatpush3.msra.mxu0 %v375_v16  ;;  %1755 = vmatprep.subr.mxu1 %v375_v16 }
  0x87   : > { %1533 = vmatmul.mubr.f32.vlgmr.msra.gmra.mxu0 %v344_v17  ;;  %1771 = vmatpush3.msra.mxu1 %v375_v16 }
  0x88   : > { %1535 = vmatprep.mubr.f32.mxu0 %v345_v18  ;;  %1556 = vmatprep.mubr.f32.mxu1 %v359_v19 }
  0x89   : > { %1557 = vmatmul.mubr.f32.vlgmr.msra.gmra.mxu1 %v360_v20  ;;  %1580 = vmatprep.subr.mxu1 %v670_v21 }
  0x8a   : > { %1559 = vmatprep.mubr.f32.mxu1 %v361_v22  ;;  %1581 = vmatpush3.msra.mxu1 %v670_v21 }
  0x8b   : > { %1536 = vmatmul.mubr.f32.gmra.mxu0 %v346_v23  ;;  %1582 = vmatprep.subr.mxu1 %v669_v24 }
  0x8c   : > { %1538 = vmatprep.mubr.f32.mxu0 %v347_v25  ;;  %1583 = vmatpush3.msra.mxu1 %v669_v24 }
  0x8d   : > { %1560 = vmatmul.mubr.f32.gmra.mxu1 %v362_v26  ;;  %1584 = vmatprep.subr.mxu1 %v668_v27 }
  0x8e   : > { %1562 = vmatprep.mubr.f32.mxu1 %v363_v28  ;;  %1585 = vmatpush3.msra.mxu1 %v668_v27 }
  0x8f   : > { %1539 = vmatmul.mubr.f32.gmra.mxu0 %v348_v29  ;;  %1586 = vmatprep.subr.mxu1 %v667_v30 }
  0x90   : > { %1541 = vmatprep.mubr.f32.mxu0 %v349_v31  ;;  %1587 = vmatpush3.msra.mxu1 %v667_v30 }
  0x91   : > { %1563 = vmatmul.mubr.f32.gmra.mxu1 %v364_v32  ;;  %1588 = vmatprep.subr.mxu1 %v666_v33 }
  0x92   : > { %1565 = vmatprep.mubr.f32.mxu1 %v365_v34  ;;  %1589 = vmatpush3.msra.mxu1 %v666_v33 }
  0x93   : > { %1542 = vmatmul.mubr.f32.gmra.mxu0 %v350_v35  ;;  %1590 = vmatprep.subr.mxu1 %v665_v36 }
  0x94   : > { %1544 = vmatprep.mubr.f32.mxu0 %v351_v37  ;;  %1591 = vmatpush3.msra.mxu1 %v665_v36 }
  0x95   : > { %1566 = vmatmul.mubr.f32.gmra.mxu1 %v366_v38  ;;  %1592 = vmatprep.subr.mxu1 %v664_v39 }
  0x96   : > { %1568 = vmatprep.mubr.f32.mxu1 %v367_v40  ;;  %1593 = vmatpush3.msra.mxu1 %v664_v39 }
  0x97   : > { %1545 = vmatmul.mubr.f32.gmra.mxu0 %v352_v41  ;;  %1594 = vmatprep.subr.mxu1 %v663_v55 }
  0x98   : > { %1547 = vmatprep.mubr.f32.mxu0 %v353_v42  ;;  %1595 = vmatpush3.msra.mxu1 %v663_v55 }
  0x99   : > { %1569 = vmatmul.mubr.f32.gmra.mxu1 %v368_v43  ;;  %1596 = vmatprep.subr.mxu1 %v662_v56 }
  0x9a   : > { %1571 = vmatprep.mubr.f32.mxu1 %v369_v44  ;;  %1597 = vmatpush3.msra.mxu1 %v662_v56 }
  0x9b   : > { %1548 = vmatmul.mubr.f32.gmra.mxu0 %v354_v45  ;;  %1598 = vmatprep.subr.mxu1 %v661_v57 }
  0x9c   : > { %1550 = vmatprep.mubr.f32.mxu0 %v355_v46  ;;  %1599 = vmatpush3.msra.mxu1 %v661_v57 }
  0x9d   : > { %1572 = vmatmul.mubr.f32.gmra.mxu1 %v370_v47  ;;  %1600 = vmatprep.subr.mxu1 %v660_v58 }
  0x9e   : > { %1574 = vmatprep.mubr.f32.mxu1 %v371_v48  ;;  %1601 = vmatpush3.msra.mxu1 %v660_v58 }
  0x9f   : > { %1551 = vmatmul.mubr.f32.gmra.mxu0 %v356_v49  ;;  %1602 = vmatprep.subr.mxu1 %v659_v59 }
  0xa0   : > { %1553 = vmatprep.mubr.f32.mxu0 %v357_v50  ;;  %1603 = vmatpush3.msra.mxu1 %v659_v59 }
  0xa1   : > { %1575 = vmatmul.mubr.f32.gmra.mxu1 %v372_v51  ;;  %1604 = vmatprep.subr.mxu1 %v658_v60 }
  0xa2   : > { %1577 = vmatprep.mubr.f32.mxu1 %v373_v52  ;;  %1605 = vmatpush3.msra.mxu1 %v658_v60 }
  0xa3   : > { %1554 = vmatmul.mubr.f32.gmra.mxu0 %v358_v53  ;;  %1606 = vmatprep.subr.mxu1 %v657_v61 }
  0xa4   : > { %1607 = vmatpush3.msra.mxu1 %v657_v61  ;;  %1660 = vmatprep.subr.mxu0 %v950_v0 }
  0xa5   : > { %1578 = vmatmul.mubr.f32.gmra.mxu1 %v374_v54  ;;  %1608 = vmatprep.subr.mxu1 %v656_v62 }
  0xa6   : > { %1609 = vmatpush3.msra.mxu1 %v656_v62  ;;  %1661 = vmatpush3.msra.mxu0 %v950_v0 }
  0xa7   : > { %1610 = vmatprep.subr.mxu1 %v655_v63  ;;  %1662 = vmatprep.subr.mxu0 %v949_v1 }
  0xa8   : > { %1611 = vmatpush3.msra.mxu1 %v655_v63  ;;  %1663 = vmatpush3.msra.mxu0 %v949_v1 }
  0xa9   : > { %1664 = vmatprep.subr.mxu0 %v948_v2 }
  0xaa   : > { %1665 = vmatpush3.msra.mxu0 %v948_v2 }
  0xab   : > { %1666 = vmatprep.subr.mxu0 %v947_v3 }
  0xac   : > { %1667 = vmatpush3.msra.mxu0 %v947_v3 }
  0xad   : > { %1668 = vmatprep.subr.mxu0 %v946_v4 }
  0xae   : > { %1669 = vmatpush3.msra.mxu0 %v946_v4 }
  0xaf   : > { %1670 = vmatprep.subr.mxu0 %v945_v5 }
  0xb0   : > { %1671 = vmatpush3.msra.mxu0 %v945_v5 }
  0xb1   : > { %1672 = vmatprep.subr.mxu0 %v944_v6 }
  0xb2   : > { %1673 = vmatpush3.msra.mxu0 %v944_v6 }
 0x147   : > { %v1534_v8 = vpop.f32.mrf.mxu0 }
 0x148   : > { %v470_v9 = vadd.f32 %v1534_v8, %v2412_v7 }
 0x149   : > { %v464_v10 = vpop.f32.mrf.mxu0  ;;  %v2415_v11 = vpop.f32.mrf.mxu1 }
 0x14a   : > { %v465_v12 = vadd.f32 %v2412_v7, %v464_v10  ;;  %v550_v61 = vadd.f32 %v2415_v11, %v2412_v7 }
 0x14b   : > { %v1537_v13 = vpop.f32.mrf.mxu0  ;;  %v544_v14 = vpop.f32.mrf.mxu1 }
 0x14c   : > { %1853 = vtanh.f32 %v465_v12  ;;  %v480_v15 = vadd.f32 %v1537_v13, %v2412_v7  ;;  %v545_v52 = vadd.f32 %v2412_v7, %v544_v14 }
 0x14d   : > { %1855 = vtanh.f32 %v470_v9  ;;  %v474_v16 = vpop.f32.mrf.mxu0  ;;  %v2419_v17 = vpop.f32.mrf.mxu1 }
 0x14e   : > { %v475_v18 = vadd.f32 %v2412_v7, %v474_v16  ;;  %v560_v2 = vadd.f32 %v2419_v17, %v2412_v7 }
 0x14f   : > { %v1540_v19 = vpop.f32.mrf.mxu0  ;;  %v554_v20 = vpop.f32.mrf.mxu1 }
 0x150   : > { %1857 = vtanh.f32 %v475_v18  ;;  %v490_v21 = vadd.f32 %v1540_v19, %v2412_v7  ;;  %v555_v59 = vadd.f32 %v2412_v7, %v554_v20 }
 0x151   : > { %1859 = vtanh.f32 %v480_v15  ;;  %v484_v22 = vpop.f32.mrf.mxu0  ;;  %v2423_v23 = vpop.f32.mrf.mxu1 }
 0x152   : > { %v485_v24 = vadd.f32 %v2412_v7, %v484_v22  ;;  %v570_v8 = vadd.f32 %v2423_v23, %v2412_v7 }
 0x153   : > { %v1543_v25 = vpop.f32.mrf.mxu0  ;;  %v564_v28 = vpop.f32.mrf.mxu1 }
 0x154   : > { %1861 = vtanh.f32 %v485_v24  ;;  %v500_v26 = vadd.f32 %v1543_v25, %v2412_v7  ;;  %v565_v0 = vadd.f32 %v2412_v7, %v564_v28 }
 0x155   : > { %1863 = vtanh.f32 %v490_v21  ;;  %v494_v27 = vpop.f32.mrf.mxu0  ;;  %v2429_v34 = vpop.f32.mrf.mxu1 }
 0x156   : > { %v495_v29 = vadd.f32 %v2412_v7, %v494_v27  ;;  %v580_v14 = vadd.f32 %v2429_v34, %v2412_v7 }
 0x157   : > { %v1546_v30 = vpop.f32.mrf.mxu0  ;;  %v574_v41 = vpop.f32.mrf.mxu1 }
 0x158   : > { %1865 = vtanh.f32 %v495_v29  ;;  %v510_v32 = vadd.f32 %v1546_v30, %v2412_v7  ;;  %v575_v5 = vadd.f32 %v2412_v7, %v574_v41  ;;  %v943_v41 = vld [vmem:[#allocation8 + $0x40] sm:$0xff] }
 0x159   : > { %v1854_v31 = vpop.eup %1853  ;;  %1867 = vtanh.f32 %v500_v26  ;;  %v504_v33 = vpop.f32.mrf.mxu0  ;;  %1674 = vmatprep.subr.mxu0 %v943_v41 }
 0x15a   : > { %v1856_v35 = vpop.eup %1855  ;;  %v505_v36 = vadd.f32 %v2412_v7, %v504_v33  ;;  %1612 = vmatprep.mubr.f32.mxu1 %v1854_v31  ;;  %v1570_v48 = vpop.f32.mrf.mxu1  ;;  %1675 = vmatpush3.msra.mxu0 %v943_v41 }
 0x15b   : > { %v1549_v37 = vpop.f32.mrf.mxu0  ;;  %1613 = vmatmul.mubr.f32.vlgmr.msra.gmra.mxu1 %v1856_v35  ;;  %v590_v19 = vadd.f32 %v1570_v48, %v2412_v7  ;;  %v935_v48 = vld [vmem:[#allocation8] sm:$0xff] }
 0x15c   : > { %1869 = vtanh.f32 %v505_v36  ;;  %v520_v39 = vadd.f32 %v1549_v37, %v2412_v7  ;;  %v584_v56 = vpop.f32.mrf.mxu1 }
 0x15d   : > { %v1858_v38 = vpop.eup %1857  ;;  %1871 = vtanh.f32 %v510_v32  ;;  %v514_v40 = vpop.f32.mrf.mxu0  ;;  %v585_v12 = vadd.f32 %v2412_v7, %v584_v56 }
 0x15e   : > { %v1860_v42 = vpop.eup %1859  ;;  %v515_v43 = vadd.f32 %v2412_v7, %v514_v40  ;;  %1615 = vmatprep.mubr.f32.mxu1 %v1858_v38  ;;  %v1573_v62 = vpop.f32.mrf.mxu1 }
 0x15f   : > { %v1552_v44 = vpop.f32.mrf.mxu0  ;;  %1616 = vmatmul.mubr.f32.gmra.mxu1 %v1860_v42  ;;  %v600_v24 = vadd.f32 %v1573_v62, %v2412_v7  ;;  %v941_v42 = vld [vmem:[#allocation8 + $0x30] sm:$0xff] }
 0x160   : > { %1873 = vtanh.f32 %v515_v43  ;;  %v530_v46 = vadd.f32 %v1552_v44, %v2412_v7  ;;  %v594_v3 = vpop.f32.mrf.mxu1  ;;  %v940_v43 = vld [vmem:[#allocation8 + $0x28] sm:$0xff]  ;;  %v939_v44 = vld [vmem:[#allocation8 + $0x20] sm:$0xff] }
 0x161   : > { %v1862_v45 = vpop.eup %1861  ;;  %1875 = vtanh.f32 %v520_v39  ;;  %v524_v47 = vpop.f32.mrf.mxu0  ;;  %v595_v17 = vadd.f32 %v2412_v7, %v594_v3 }
 0x162   : > { %v1864_v49 = vpop.eup %1863  ;;  %v525_v50 = vadd.f32 %v2412_v7, %v524_v47  ;;  %1618 = vmatprep.mubr.f32.mxu1 %v1862_v45  ;;  %v1576_v9 = vpop.f32.mrf.mxu1  ;;  %v938_v45 = vld [vmem:[#allocation8 + $0x18] sm:$0xff]  ;;  %v936_v47 = vld [vmem:[#allocation8 + $0x8] sm:$0xff] }
 0x163   : > { %v1555_v51 = vpop.f32.mrf.mxu0  ;;  %1619 = vmatmul.mubr.f32.gmra.mxu1 %v1864_v49  ;;  %v610_v29 = vadd.f32 %v1576_v9, %v2412_v7  ;;  %v2461_v49 = vld [vmem:[%s2622_s4] ss:$0 sm:$0xff] }
 0x164   : > { %1877 = vtanh.f32 %v525_v50  ;;  %v540_v54 = vadd.f32 %v1555_v51, %v2412_v7  ;;  %v604_v15 = vpop.f32.mrf.mxu1 }
 0x165   : > { %v1866_v53 = vpop.eup %1865  ;;  %1879 = vtanh.f32 %v530_v46  ;;  %v534_v55 = vpop.f32.mrf.mxu0  ;;  %v605_v22 = vadd.f32 %v2412_v7, %v604_v15  ;;  %v937_v46 = vld [vmem:[#allocation8 + $0x10] sm:$0xff] }
 0x166   : > { %v1868_v57 = vpop.eup %1867  ;;  %v535_v58 = vadd.f32 %v2412_v7, %v534_v55  ;;  %1621 = vmatprep.mubr.f32.mxu1 %v1866_v53  ;;  %1881 = vtanh.f32 %v545_v52  ;;  %v1579_v20 = vpop.f32.mrf.mxu1 }
 0x167   : > { %1622 = vmatmul.mubr.f32.gmra.mxu1 %v1868_v57  ;;  %v620_v32 = vadd.f32 %v1579_v20, %v2412_v7 }
 0x168   : > { %1883 = vtanh.f32 %v535_v58  ;;  %v614_v25 = vpop.f32.mrf.mxu1 }
 0x169   : > { %v1870_v60 = vpop.eup %1869  ;;  %1885 = vtanh.f32 %v540_v54  ;;  %v615_v27 = vadd.f32 %v2412_v7, %v614_v25  ;;  %v942_v7 = vld [vmem:[#allocation8 + $0x38] sm:$0xff] }
 0x16a   : > { %v1872_v63 = vpop.eup %1871  ;;  %1624 = vmatprep.mubr.f32.mxu1 %v1870_v60  ;;  %1887 = vtanh.f32 %v555_v59  ;;  %1676 = vmatprep.subr.mxu0 %v942_v7 }
 0x16b   : > { %1625 = vmatmul.mubr.f32.gmra.mxu1 %v1872_v63  ;;  %1889 = vtanh.f32 %v550_v61  ;;  %1677 = vmatpush3.msra.mxu0 %v942_v7 }
 0x16c   : > { %1891 = vtanh.f32 %v565_v0  ;;  %1678 = vmatprep.subr.mxu0 %v941_v42 }
 0x16d   : > { %v1874_v1 = vpop.eup %1873  ;;  %1893 = vtanh.f32 %v560_v2  ;;  %1679 = vmatpush3.msra.mxu0 %v941_v42 }
 0x16e   : > { %v1876_v4 = vpop.eup %1875  ;;  %1627 = vmatprep.mubr.f32.mxu1 %v1874_v1  ;;  %1895 = vtanh.f32 %v575_v5  ;;  %1680 = vmatprep.subr.mxu0 %v940_v43 }
 0x16f   : > { %1628 = vmatmul.mubr.f32.gmra.mxu1 %v1876_v4  ;;  %1897 = vtanh.f32 %v570_v8  ;;  %1681 = vmatpush3.msra.mxu0 %v940_v43 }
 0x170   : > { %1899 = vtanh.f32 %v585_v12  ;;  %1682 = vmatprep.subr.mxu0 %v939_v44 }
 0x171   : > { %v1878_v6 = vpop.eup %1877  ;;  %1901 = vtanh.f32 %v580_v14  ;;  %1683 = vmatpush3.msra.mxu0 %v939_v44 }
 0x172   : > { %v1880_v10 = vpop.eup %1879  ;;  %1630 = vmatprep.mubr.f32.mxu1 %v1878_v6  ;;  %1903 = vtanh.f32 %v595_v17  ;;  %1684 = vmatprep.subr.mxu0 %v938_v45 }
 0x173   : > { %1631 = vmatmul.mubr.f32.gmra.mxu1 %v1880_v10  ;;  %v1882_v11 = vpop.eup %1881  ;;  %1905 = vtanh.f32 %v590_v19  ;;  %1685 = vmatpush3.msra.mxu0 %v938_v45 }
 0x174   : > { %1907 = vtanh.f32 %v605_v22  ;;  %1686 = vmatprep.subr.mxu0 %v937_v46 }
 0x175   : > { %v1884_v13 = vpop.eup %1883  ;;  %1909 = vtanh.f32 %v600_v24  ;;  %1687 = vmatpush3.msra.mxu0 %v937_v46 }
 0x176   : > { %v1886_v16 = vpop.eup %1885  ;;  %1633 = vmatprep.mubr.f32.mxu1 %v1884_v13  ;;  %1911 = vtanh.f32 %v615_v27  ;;  %1688 = vmatprep.subr.mxu0 %v936_v47 }
 0x177   : > { %1634 = vmatmul.mubr.f32.gmra.mxu1 %v1886_v16  ;;  %v1888_v18 = vpop.eup %1887  ;;  %1913 = vtanh.f32 %v610_v29  ;;  %1689 = vmatpush3.msra.mxu0 %v936_v47 }
 0x178   : > { %1636 = vmatprep.mubr.f32.mxu1 %v1882_v11  ;;  %v1890_v21 = vpop.eup %1889  ;;  %1915 = vtanh.f32 %v620_v32  ;;  %1690 = vmatprep.subr.mxu0 %v935_v48 }
 0x179   : > { %v1892_v23 = vpop.eup %1891  ;;  %1691 = vmatpush3.msra.mxu0 %v935_v48 }
 0x17a   : > { %v1894_v26 = vpop.eup %1893 }
 0x17b   : > { %1637 = vmatmul.mubr.f32.gmra.mxu1 %v1890_v21  ;;  %v1896_v28 = vpop.eup %1895 }
 0x17c   : > { %1639 = vmatprep.mubr.f32.mxu1 %v1888_v18  ;;  %v1898_v30 = vpop.eup %1897 }
 0x17d   : > { %v1900_v31 = vpop.eup %1899 }
 0x17e   : > { %v1902_v33 = vpop.eup %1901 }
 0x17f   : > { %1640 = vmatmul.mubr.f32.gmra.mxu1 %v1894_v26  ;;  %v1904_v34 = vpop.eup %1903 }
 0x180   : > { %1642 = vmatprep.mubr.f32.mxu1 %v1892_v23  ;;  %v1906_v35 = vpop.eup %1905 }
 0x181   : > { %v1908_v36 = vpop.eup %1907 }
 0x182   : > { %v1910_v37 = vpop.eup %1909 }
 0x183   : > { %1643 = vmatmul.mubr.f32.gmra.mxu1 %v1898_v30  ;;  %v1912_v38 = vpop.eup %1911 }
 0x184   : > { %1645 = vmatprep.mubr.f32.mxu1 %v1896_v28  ;;  %v1914_v39 = vpop.eup %1913 }
 0x185   : > { %v1916_v40 = vpop.eup %1915 }
 0x187   : > { %1646 = vmatmul.mubr.f32.gmra.mxu1 %v1902_v33 }
 0x188   : > { %1648 = vmatprep.mubr.f32.mxu1 %v1900_v31 }
 0x18b   : > { %1649 = vmatmul.mubr.f32.gmra.mxu1 %v1906_v35 }
 0x18c   : > { %1651 = vmatprep.mubr.f32.mxu1 %v1904_v34 }
 0x18f   : > { %1652 = vmatmul.mubr.f32.gmra.mxu1 %v1910_v37 }
 0x190   : > { %1654 = vmatprep.mubr.f32.mxu1 %v1908_v36 }
 0x193   : > { %1655 = vmatmul.mubr.f32.gmra.mxu1 %v1914_v39 }
 0x194   : > { %1657 = vmatprep.mubr.f32.mxu1 %v1912_v38 }
 0x197   : > { %1658 = vmatmul.mubr.f32.gmra.mxu1 %v1916_v40 }
 0x21b   : > { %v1614_v50 = vpop.f32.mrf.mxu1 }
 0x21c   : > { %v750_v51 = vadd.f32 %v1614_v50, %v2461_v49 }
 0x21d   : > { %v744_v52 = vpop.f32.mrf.mxu1 }
 0x21e   : > { %v745_v53 = vadd.f32 %v2461_v49, %v744_v52 }
 0x21f   : > { %v1617_v54 = vpop.f32.mrf.mxu1 }
 0x220   : > { %1917 = vtanh.f32 %v745_v53  ;;  %v760_v55 = vadd.f32 %v1617_v54, %v2461_v49 }
 0x221   : > { %1919 = vtanh.f32 %v750_v51  ;;  %v754_v56 = vpop.f32.mrf.mxu1 }
 0x222   : > { %v755_v57 = vadd.f32 %v2461_v49, %v754_v56 }
 0x223   : > { %v1620_v58 = vpop.f32.mrf.mxu1 }
 0x224   : > { %1921 = vtanh.f32 %v755_v57  ;;  %v770_v59 = vadd.f32 %v1620_v58, %v2461_v49 }
 0x225   : > { %1923 = vtanh.f32 %v760_v55  ;;  %v764_v60 = vpop.f32.mrf.mxu1 }
 0x226   : > { %v765_v61 = vadd.f32 %v2461_v49, %v764_v60 }
 0x227   : > { %v1623_v62 = vpop.f32.mrf.mxu1 }
 0x228   : > { %1925 = vtanh.f32 %v765_v61  ;;  %v780_v63 = vadd.f32 %v1623_v62, %v2461_v49 }
 0x229   : > { %1927 = vtanh.f32 %v770_v59  ;;  %v774_v0 = vpop.f32.mrf.mxu1 }
 0x22a   : > { %v775_v1 = vadd.f32 %v2461_v49, %v774_v0 }
 0x22b   : > { %v1626_v2 = vpop.f32.mrf.mxu1 }
 0x22c   : > { %1929 = vtanh.f32 %v775_v1  ;;  %v790_v4 = vadd.f32 %v1626_v2, %v2461_v49 }
 0x22d   : > { %v1918_v3 = vpop.eup %1917  ;;  %1931 = vtanh.f32 %v780_v63  ;;  %v784_v5 = vpop.f32.mrf.mxu1 }
 0x22e   : > { %v1920_v6 = vpop.eup %1919  ;;  %v785_v8 = vadd.f32 %v2461_v49, %v784_v5  ;;  %1692 = vmatprep.mubr.f32.mxu0 %v1918_v3 }
 0x22f   : > { %v1629_v9 = vpop.f32.mrf.mxu1  ;;  %1693 = vmatmul.mubr.f32.vlgmr.msra.gmra.mxu0 %v1920_v6 }
 0x230   : > { %1933 = vtanh.f32 %v785_v8  ;;  %v800_v11 = vadd.f32 %v1629_v9, %v2461_v49 }
 0x231   : > { %v1922_v10 = vpop.eup %1921  ;;  %1935 = vtanh.f32 %v790_v4  ;;  %v794_v12 = vpop.f32.mrf.mxu1 }
 0x232   : > { %v1924_v13 = vpop.eup %1923  ;;  %v795_v14 = vadd.f32 %v2461_v49, %v794_v12  ;;  %1695 = vmatprep.mubr.f32.mxu0 %v1922_v10 }
 0x233   : > { %v1632_v15 = vpop.f32.mrf.mxu1  ;;  %1696 = vmatmul.mubr.f32.gmra.mxu0 %v1924_v13 }
 0x234   : > { %1937 = vtanh.f32 %v795_v14  ;;  %v810_v17 = vadd.f32 %v1632_v15, %v2461_v49 }
 0x235   : > { %v1926_v16 = vpop.eup %1925  ;;  %1939 = vtanh.f32 %v800_v11  ;;  %v804_v18 = vpop.f32.mrf.mxu1 }
 0x236   : > { %v1928_v19 = vpop.eup %1927  ;;  %v805_v20 = vadd.f32 %v2461_v49, %v804_v18  ;;  %1698 = vmatprep.mubr.f32.mxu0 %v1926_v16 }
 0x237   : > { %v1635_v21 = vpop.f32.mrf.mxu1  ;;  %1699 = vmatmul.mubr.f32.gmra.mxu0 %v1928_v19 }
 0x238   : > { %1941 = vtanh.f32 %v805_v20  ;;  %v820_v23 = vadd.f32 %v1635_v21, %v2461_v49 }
 0x239   : > { %v1930_v22 = vpop.eup %1929  ;;  %1943 = vtanh.f32 %v810_v17  ;;  %v814_v24 = vpop.f32.mrf.mxu1 }
 0x23a   : > { %v1932_v25 = vpop.eup %1931  ;;  %v815_v26 = vadd.f32 %v2461_v49, %v814_v24  ;;  %1701 = vmatprep.mubr.f32.mxu0 %v1930_v22 }
 0x23b   : > { %v1638_v27 = vpop.f32.mrf.mxu1  ;;  %1702 = vmatmul.mubr.f32.gmra.mxu0 %v1932_v25 }
 0x23c   : > { %1945 = vtanh.f32 %v815_v26  ;;  %v830_v29 = vadd.f32 %v1638_v27, %v2461_v49 }
 0x23d   : > { %v1934_v28 = vpop.eup %1933  ;;  %1947 = vtanh.f32 %v820_v23  ;;  %v824_v30 = vpop.f32.mrf.mxu1 }
 0x23e   : > { %v1936_v31 = vpop.eup %1935  ;;  %v825_v32 = vadd.f32 %v2461_v49, %v824_v30  ;;  %1704 = vmatprep.mubr.f32.mxu0 %v1934_v28 }
 0x23f   : > { %v1641_v33 = vpop.f32.mrf.mxu1  ;;  %1705 = vmatmul.mubr.f32.gmra.mxu0 %v1936_v31 }
 0x240   : > { %1949 = vtanh.f32 %v825_v32  ;;  %v840_v35 = vadd.f32 %v1641_v33, %v2461_v49 }
 0x241   : > { %v1938_v34 = vpop.eup %1937  ;;  %1951 = vtanh.f32 %v830_v29  ;;  %v834_v36 = vpop.f32.mrf.mxu1 }
 0x242   : > { %v1940_v37 = vpop.eup %1939  ;;  %v835_v38 = vadd.f32 %v2461_v49, %v834_v36  ;;  %1707 = vmatprep.mubr.f32.mxu0 %v1938_v34 }
 0x243   : > { %v1644_v39 = vpop.f32.mrf.mxu1  ;;  %1708 = vmatmul.mubr.f32.gmra.mxu0 %v1940_v37 }
 0x244   : > { %1953 = vtanh.f32 %v835_v38  ;;  %v850_v41 = vadd.f32 %v1644_v39, %v2461_v49 }
 0x245   : > { %v1942_v40 = vpop.eup %1941  ;;  %1955 = vtanh.f32 %v840_v35  ;;  %v844_v7 = vpop.f32.mrf.mxu1 }
 0x246   : > { %v1944_v42 = vpop.eup %1943  ;;  %v845_v43 = vadd.f32 %v2461_v49, %v844_v7  ;;  %1710 = vmatprep.mubr.f32.mxu0 %v1942_v40 }
 0x247   : > { %v1647_v44 = vpop.f32.mrf.mxu1  ;;  %1711 = vmatmul.mubr.f32.gmra.mxu0 %v1944_v42 }
 0x248   : > { %1957 = vtanh.f32 %v845_v43  ;;  %v860_v46 = vadd.f32 %v1647_v44, %v2461_v49 }
 0x249   : > { %v1946_v45 = vpop.eup %1945  ;;  %1959 = vtanh.f32 %v850_v41  ;;  %v854_v47 = vpop.f32.mrf.mxu1 }
 0x24a   : > { %v1948_v48 = vpop.eup %1947  ;;  %v855_v50 = vadd.f32 %v2461_v49, %v854_v47  ;;  %1713 = vmatprep.mubr.f32.mxu0 %v1946_v45 }
 0x24b   : > { %v1650_v51 = vpop.f32.mrf.mxu1  ;;  %1714 = vmatmul.mubr.f32.gmra.mxu0 %v1948_v48 }
 0x24c   : > { %1961 = vtanh.f32 %v855_v50  ;;  %v870_v53 = vadd.f32 %v1650_v51, %v2461_v49 }
 0x24d   : > { %v1950_v52 = vpop.eup %1949  ;;  %1963 = vtanh.f32 %v860_v46  ;;  %v864_v54 = vpop.f32.mrf.mxu1 }
 0x24e   : > { %v1952_v55 = vpop.eup %1951  ;;  %v865_v56 = vadd.f32 %v2461_v49, %v864_v54  ;;  %1716 = vmatprep.mubr.f32.mxu0 %v1950_v52 }
 0x24f   : > { %v1653_v57 = vpop.f32.mrf.mxu1  ;;  %1717 = vmatmul.mubr.f32.gmra.mxu0 %v1952_v55 }
 0x250   : > { %1965 = vtanh.f32 %v865_v56  ;;  %v880_v59 = vadd.f32 %v1653_v57, %v2461_v49 }
 0x251   : > { %v1954_v58 = vpop.eup %1953  ;;  %1967 = vtanh.f32 %v870_v53  ;;  %v874_v60 = vpop.f32.mrf.mxu1 }
 0x252   : > { %v1956_v61 = vpop.eup %1955  ;;  %v875_v62 = vadd.f32 %v2461_v49, %v874_v60  ;;  %1719 = vmatprep.mubr.f32.mxu0 %v1954_v58 }
 0x253   : > { %v1656_v63 = vpop.f32.mrf.mxu1  ;;  %1720 = vmatmul.mubr.f32.gmra.mxu0 %v1956_v61 }
 0x254   : > { %1969 = vtanh.f32 %v875_v62  ;;  %v890_v1 = vadd.f32 %v1656_v63, %v2461_v49 }
 0x255   : > { %v1958_v0 = vpop.eup %1957  ;;  %1971 = vtanh.f32 %v880_v59  ;;  %v884_v2 = vpop.f32.mrf.mxu1 }
 0x256   : > { %v1960_v3 = vpop.eup %1959  ;;  %v885_v4 = vadd.f32 %v2461_v49, %v884_v2  ;;  %1722 = vmatprep.mubr.f32.mxu0 %v1958_v0 }
 0x257   : > { %v1659_v5 = vpop.f32.mrf.mxu1  ;;  %1723 = vmatmul.mubr.f32.gmra.mxu0 %v1960_v3 }
 0x258   : > { %1973 = vtanh.f32 %v885_v4  ;;  %v900_v8 = vadd.f32 %v1659_v5, %v2461_v49 }
 0x259   : > { %v1962_v6 = vpop.eup %1961  ;;  %1975 = vtanh.f32 %v890_v1  ;;  %v894_v9 = vpop.f32.mrf.mxu1 }
 0x25a   : > { %v1964_v10 = vpop.eup %1963  ;;  %v895_v11 = vadd.f32 %v2461_v49, %v894_v9  ;;  %1725 = vmatprep.mubr.f32.mxu0 %v1962_v6  ;;  %v2498_v49 = vld [vmem:[%s2624_s6] ss:$0 sm:$0xff] }
 0x25b   : > { %1726 = vmatmul.mubr.f32.gmra.mxu0 %v1964_v10 }
 0x25c   : > { %1977 = vtanh.f32 %v895_v11 }
 0x25d   : > { %v1966_v12 = vpop.eup %1965  ;;  %1979 = vtanh.f32 %v900_v8 }
 0x25e   : > { %v1968_v13 = vpop.eup %1967  ;;  %1728 = vmatprep.mubr.f32.mxu0 %v1966_v12 }
 0x25f   : > { %1729 = vmatmul.mubr.f32.gmra.mxu0 %v1968_v13 }
 0x261   : > { %v1970_v14 = vpop.eup %1969 }
 0x262   : > { %v1972_v15 = vpop.eup %1971  ;;  %1731 = vmatprep.mubr.f32.mxu0 %v1970_v14 }
 0x263   : > { %1732 = vmatmul.mubr.f32.gmra.mxu0 %v1972_v15 }
 0x265   : > { %v1974_v16 = vpop.eup %1973 }
 0x266   : > { %v1976_v17 = vpop.eup %1975  ;;  %1734 = vmatprep.mubr.f32.mxu0 %v1974_v16 }
 0x267   : > { %1735 = vmatmul.mubr.f32.gmra.mxu0 %v1976_v17 }
 0x269   : > { %v1978_v18 = vpop.eup %1977 }
 0x26a   : > { %v1980_v19 = vpop.eup %1979  ;;  %1737 = vmatprep.mubr.f32.mxu0 %v1978_v18 }
 0x26b   : > { %1738 = vmatmul.mubr.f32.gmra.mxu0 %v1980_v19 }
 0x2ef   : > { %v1694_v20 = vpop.f32.mrf.mxu0 }
 0x2f0   : > { %v1030_v21 = vadd.f32 %v1694_v20, %v2498_v49 }
 0x2f1   : > { %v1024_v22 = vpop.f32.mrf.mxu0 }
 0x2f2   : > { %1184 = vst [vmem:[%s2503_s11 + $0x8] sm:$0xff] %v1030_v21  ;;  %v1025_v23 = vadd.f32 %v2498_v49, %v1024_v22 }
 0x2f3   : > { %v1697_v24 = vpop.f32.mrf.mxu0 }
 0x2f4   : > { %1183 = vst [vmem:[%s2503_s11] sm:$0xff] %v1025_v23  ;;  %v1040_v25 = vadd.f32 %v1697_v24, %v2498_v49 }
 0x2f5   : > { %v1034_v26 = vpop.f32.mrf.mxu0 }
 0x2f6   : > { %1186 = vst [vmem:[%s2503_s11 + $0x18] sm:$0xff] %v1040_v25  ;;  %v1035_v27 = vadd.f32 %v2498_v49, %v1034_v26 }
 0x2f7   : > { %v1700_v28 = vpop.f32.mrf.mxu0 }
 0x2f8   : > { %1185 = vst [vmem:[%s2503_s11 + $0x10] sm:$0xff] %v1035_v27  ;;  %v1050_v29 = vadd.f32 %v1700_v28, %v2498_v49 }
 0x2f9   : > { %v1044_v30 = vpop.f32.mrf.mxu0 }
 0x2fa   : > { %1188 = vst [vmem:[%s2503_s11 + $0x28] sm:$0xff] %v1050_v29  ;;  %v1045_v31 = vadd.f32 %v2498_v49, %v1044_v30 }
 0x2fb   : > { %v1703_v32 = vpop.f32.mrf.mxu0 }
 0x2fc   : > { %1187 = vst [vmem:[%s2503_s11 + $0x20] sm:$0xff] %v1045_v31  ;;  %v1060_v33 = vadd.f32 %v1703_v32, %v2498_v49 }
 0x2fd   : > { %v1054_v34 = vpop.f32.mrf.mxu0 }
 0x2fe   : > { %1190 = vst [vmem:[%s2503_s11 + $0x38] sm:$0xff] %v1060_v33  ;;  %v1055_v35 = vadd.f32 %v2498_v49, %v1054_v34 }
 0x2ff   : > { %v1706_v36 = vpop.f32.mrf.mxu0 }
 0x300   : > { %1189 = vst [vmem:[%s2503_s11 + $0x30] sm:$0xff] %v1055_v35  ;;  %v1070_v37 = vadd.f32 %v1706_v36, %v2498_v49 }
 0x301   : > { %v1064_v38 = vpop.f32.mrf.mxu0 }
 0x302   : > { %1192 = vst [vmem:[%s2503_s11 + $0x48] sm:$0xff] %v1070_v37  ;;  %v1065_v39 = vadd.f32 %v2498_v49, %v1064_v38 }
 0x303   : > { %v1709_v40 = vpop.f32.mrf.mxu0 }
 0x304   : > { %1191 = vst [vmem:[%s2503_s11 + $0x40] sm:$0xff] %v1065_v39  ;;  %v1080_v41 = vadd.f32 %v1709_v40, %v2498_v49 }
 0x305   : > { %v1074_v7 = vpop.f32.mrf.mxu0 }
 0x306   : > { %1194 = vst [vmem:[%s2503_s11 + $0x58] sm:$0xff] %v1080_v41  ;;  %v1075_v42 = vadd.f32 %v2498_v49, %v1074_v7 }
 0x307   : > { %v1712_v43 = vpop.f32.mrf.mxu0 }
 0x308   : > { %1193 = vst [vmem:[%s2503_s11 + $0x50] sm:$0xff] %v1075_v42  ;;  %v1090_v44 = vadd.f32 %v1712_v43, %v2498_v49 }
 0x309   : > { %v1084_v45 = vpop.f32.mrf.mxu0 }
 0x30a   : > { %1196 = vst [vmem:[%s2503_s11 + $0x68] sm:$0xff] %v1090_v44  ;;  %v1085_v46 = vadd.f32 %v2498_v49, %v1084_v45 }
 0x30b   : > { %v1715_v47 = vpop.f32.mrf.mxu0 }
 0x30c   : > { %1195 = vst [vmem:[%s2503_s11 + $0x60] sm:$0xff] %v1085_v46  ;;  %v1100_v48 = vadd.f32 %v1715_v47, %v2498_v49 }
 0x30d   : > { %v1094_v50 = vpop.f32.mrf.mxu0 }
 0x30e   : > { %1198 = vst [vmem:[%s2503_s11 + $0x78] sm:$0xff] %v1100_v48  ;;  %v1095_v51 = vadd.f32 %v2498_v49, %v1094_v50 }
 0x30f   : > { %v1718_v52 = vpop.f32.mrf.mxu0 }
 0x310   : > { %1197 = vst [vmem:[%s2503_s11 + $0x70] sm:$0xff] %v1095_v51  ;;  %v1110_v53 = vadd.f32 %v1718_v52, %v2498_v49 }
 0x311   : > { %v1104_v54 = vpop.f32.mrf.mxu0 }
 0x312   : > { %1200 = vst [vmem:[%s2503_s11 + $0x88] sm:$0xff] %v1110_v53  ;;  %v1105_v55 = vadd.f32 %v2498_v49, %v1104_v54 }
 0x313   : > { %v1721_v56 = vpop.f32.mrf.mxu0 }
 0x314   : > { %1199 = vst [vmem:[%s2503_s11 + $0x80] sm:$0xff] %v1105_v55  ;;  %v1120_v57 = vadd.f32 %v1721_v56, %v2498_v49 }
 0x315   : > { %v1114_v58 = vpop.f32.mrf.mxu0 }
 0x316   : > { %1202 = vst [vmem:[%s2503_s11 + $0x98] sm:$0xff] %v1120_v57  ;;  %v1115_v59 = vadd.f32 %v2498_v49, %v1114_v58 }
 0x317   : > { %v1724_v60 = vpop.f32.mrf.mxu0 }
 0x318   : > { %1201 = vst [vmem:[%s2503_s11 + $0x90] sm:$0xff] %v1115_v59  ;;  %v1130_v61 = vadd.f32 %v1724_v60, %v2498_v49 }
 0x319   : > { %v1124_v62 = vpop.f32.mrf.mxu0 }
 0x31a   : > { %1204 = vst [vmem:[%s2503_s11 + $0xa8] sm:$0xff] %v1130_v61  ;;  %v1125_v63 = vadd.f32 %v2498_v49, %v1124_v62 }
 0x31b   : > { %v1727_v0 = vpop.f32.mrf.mxu0 }
 0x31c   : > { %1203 = vst [vmem:[%s2503_s11 + $0xa0] sm:$0xff] %v1125_v63  ;;  %v1140_v1 = vadd.f32 %v1727_v0, %v2498_v49 }
 0x31d   : > { %v1134_v2 = vpop.f32.mrf.mxu0 }
 0x31e   : > { %1206 = vst [vmem:[%s2503_s11 + $0xb8] sm:$0xff] %v1140_v1  ;;  %v1135_v3 = vadd.f32 %v2498_v49, %v1134_v2 }
 0x31f   : > { %v1730_v4 = vpop.f32.mrf.mxu0 }
 0x320   : > { %1205 = vst [vmem:[%s2503_s11 + $0xb0] sm:$0xff] %v1135_v3  ;;  %v1150_v5 = vadd.f32 %v1730_v4, %v2498_v49 }
 0x321   : > { %v1144_v6 = vpop.f32.mrf.mxu0 }
 0x322   : > { %1208 = vst [vmem:[%s2503_s11 + $0xc8] sm:$0xff] %v1150_v5  ;;  %v1145_v8 = vadd.f32 %v2498_v49, %v1144_v6 }
 0x323   : > { %v1733_v9 = vpop.f32.mrf.mxu0 }
 0x324   : > { %1207 = vst [vmem:[%s2503_s11 + $0xc0] sm:$0xff] %v1145_v8  ;;  %v1160_v10 = vadd.f32 %v1733_v9, %v2498_v49 }
 0x325   : > { %v1154_v11 = vpop.f32.mrf.mxu0 }
 0x326   : > { %1210 = vst [vmem:[%s2503_s11 + $0xd8] sm:$0xff] %v1160_v10  ;;  %v1155_v12 = vadd.f32 %v2498_v49, %v1154_v11 }
 0x327   : > { %v1736_v13 = vpop.f32.mrf.mxu0 }
 0x328   : > { %1209 = vst [vmem:[%s2503_s11 + $0xd0] sm:$0xff] %v1155_v12  ;;  %v1170_v14 = vadd.f32 %v1736_v13, %v2498_v49 }
 0x329   : > { %v1164_v15 = vpop.f32.mrf.mxu0 }
 0x32a   : > { %1212 = vst [vmem:[%s2503_s11 + $0xe8] sm:$0xff] %v1170_v14  ;;  %v1165_v16 = vadd.f32 %v2498_v49, %v1164_v15 }
 0x32b   : > { %v1739_v17 = vpop.f32.mrf.mxu0 }
 0x32c   : > { %1211 = vst [vmem:[%s2503_s11 + $0xe0] sm:$0xff] %v1165_v16  ;;  %v1180_v18 = vadd.f32 %v1739_v17, %v2498_v49 }
 0x32d   : > { %v1174_v19 = vpop.f32.mrf.mxu0 }
 0x32e   : > { %1214 = vst [vmem:[%s2503_s11 + $0xf8] sm:$0xff] %v1180_v18  ;;  %v1175_v20 = vadd.f32 %v2498_v49, %v1174_v19 }
 0x330   : > { %1213 = vst [vmem:[%s2503_s11 + $0xf0] sm:$0xff] %v1175_v20 }
 0x331   : > { %2100 = shalt.err (!%p2097_p10)
}
 0x332   : > { %s2101_s10 = scalar_lea.hbm %s2570_s1, 4096  ;;  %s2105_s29 = scalar_lea.hbm %s2625_s7, 8192 }
 0x333   : > { %p2102_p6 = scmp.ne.s32.totalorder %s2570_s1, %s2101_s10  ;;  %p2106_p3 = scmp.lt.s32.totalorder %s2570_s1, %s2625_s7 }
 0x334   : > { %p2107_p11 = scmp.lt.s32.totalorder %s2105_s29, %s2101_s10 }
 0x335   : > { %p2103_p4 = pnand %p2102_p6, %p2648_p1 }
 0x336   : > { %p2108_p5 = por %p2107_p11, %p2106_p3 }
 0x337   : > { %p2104_p8 = pneg %p2103_p4 }
 0x339   : > { %p2109_p7 = pnand %p2108_p5, %p2104_p8 }
 0x33b   : > { %2112 = shalt.err (!%p2109_p7)
}
 0x33c   : > { %s2168_s18 = smov 128   ;;  %s2169_s23 = smov 8  }
 0x33d   : > { %1786 = dma.vmem_to_hbm [thread:$0]  (%p2648_p1), %s2572_s22, 4096, %s2570_s1, %s1216_s28, %s2168_s18, %s2168_s18, %s2169_s23  }
 0x33e PF: > { %s1244_s16 = sand.u32 1, %s2147_s24   ;;  %p2649_p12 = scmp.ne.s32.totalorder %s2634_s8, 0 }
 0x33f   : > { %p2650_p9 = scmp.ge.s32.totalorder %s2159_s27, 2  ;;  %s1245_s12 = scalar_lea.sflag [#allocation4], %s1244_s16 }
 0x341   : > { %p1803_p13 = pnand %p2650_p9, %p2649_p12 }
 0x343   : > { %p1804_p0 = pneg %p1803_p13 }
 0x345   : > { %2142 = dma.done.wait (%p1804_p0), %s1245_s12, 4096  }
 0x346   : > { %2144 = vsyncadd (%p1804_p0), %s1245_s12, 4294963200  ;;  %p22_p2 = scmp.ge.s32.totalorder %s2299_s14, 4   ;;  %s2651_s24 = smov %s2151_s25 }
 0x347   : > { %s2652_s25 = smov %s2155_s26  ;;  %s2653_s26 = smov %s2309_s17 }
 0x348   : > { %s2654_s27 = smov %s2299_s14  ;;  %24 = sbr.rel (!%p22_p2) target bundleno = 9 (0x9), region = 105 }
 0x34d   :  { %1250 = vsyncpa [#allocation3], 1 }
 0x34e   :  { %1252 = vsyncpa [#allocation3 + $0x1], 1 }
 0x34f   :  { %1253 = vsyncpa [#allocation6], 1 }
 0x350   :  { %1254 = vsyncpa [#allocation9], 1 }
 0x351   :  { %1255 = vsyncpa [#allocation4], 1 }
 0x352   :  { %1257 = vsyncpa [#allocation4 + $0x1], 1 }

</bundles_post_ra>
